<compile_context>
chip_gen: v7x
topology: tpu7x:2x2x1
jax: 0.10.0
libtpu: 0.0.40
codegen_flags: <defaults>
</compile_context>

<pallas_src>
import functools

import jax
import jax.numpy as jnp
from jax.experimental import pallas as pl
from jax.experimental.pallas import tpu as pltpu


def _round_up(x, m):
    return ((x + m - 1) // m) * m


def _categorical_kernel(x_ref, w_ref, b_ref, out_ref, *, compute_dtype):
    # x_ref:   (TB, D)      f32 input tile (partial last block handled by Pallas)
    # w_ref:   (D, O_pad)   transposed weight (compute_dtype), resident
    # b_ref:   (1, O_pad)   f32 bias row; padded lanes hold -inf
    # out_ref: (TB, O) or (TB, O_pad)  normalized logits (log-probs)
    x = x_ref[...]
    if x.dtype != compute_dtype:
        # bf16 cast of the streamed tile happens here (hidden under DMA),
        # never in the wrapper.
        x = x.astype(compute_dtype)

    logits = jnp.dot(x, w_ref[...], preferred_element_type=jnp.float32)
    # Padded W^T columns are zero, padded bias lanes are -inf, so padded
    # logits become -inf and drop out of the log-softmax automatically.
    logits = logits + b_ref[...]

    # Numerically-stable log-softmax along the action axis (f32 throughout).
    m = jnp.max(logits, axis=-1, keepdims=True)
    z = logits - m
    lse = jnp.log(jnp.sum(jnp.exp(z), axis=-1, keepdims=True))
    res = z - lse

    if res.shape[-1] != out_ref.shape[-1]:
        # Store only the valid action columns (masked vst, cheap at this
        # width) so no post-kernel slice pass over the output is needed.
        res = res[:, : out_ref.shape[-1]]
    out_ref[...] = res.astype(out_ref.dtype)


@functools.partial(
    jax.jit,
    static_argnames=("block_b", "compute_dtype", "out_dtype", "trim_in_kernel"),
)
def categorical_forward(x, weight, bias, *, block_b=None,
                        compute_dtype=jnp.bfloat16,
                        out_dtype=jnp.float32,
                        trim_in_kernel=True):
    """Normalized logits (log-probs) of FixedCategorical(logits = x @ W^T + b).

    x:      (B, num_inputs)            float32
    weight: (num_outputs, num_inputs)  float32  (nn.Linear weight)
    bias:   (1, num_outputs) or (num_outputs,) float32

    Returns (B, num_outputs) if trim_in_kernel else (B, O_pad) where the
    caller should consume out[..., :num_outputs] (lazy slice, v5e-friendly).
    """
    compute_dtype = jnp.dtype(compute_dtype)
    out_dtype = jnp.dtype(out_dtype)

    B, D = x.shape
    O = weight.shape[0]
    # Lane-dense compute: pad the action axis to a multiple of 128.
    O_pad = _round_up(O, 128)

    # ---- batch tile selection -------------------------------------------
    if block_b is None:
        # Per-row VMEM footprint: double-buffered f32 x tile, double-buffered
        # output tile (lane-padded to O_pad in VMEM), plus f32 intermediates.
        per_row = 2 * D * 4 + 4 * O_pad * 4
        budget = 40 << 20                     # comfortably under v7x's 64 MiB
        cap = max(8, min(8192, (budget // per_row) // 8 * 8))
        if B <= min(cap, 1024):
            block_b = _round_up(B, 8)         # single step; overhead negligible
        else:
            # >= 2 steps so dimension_semantics=("parallel",) can shard the
            # grid across the 2 TensorCores on v7x.
            n_steps = max(2, pl.cdiv(B, cap))
            block_b = _round_up(pl.cdiv(B, n_steps), 8)
    grid = (pl.cdiv(B, block_b),)             # partial last block is fine

    # ---- small resident operands (cheap one-time wrapper work) -----------
    # Weight / bias are O(D*O): casting & padding them here is negligible and
    # NOT the "pre-scale in the wrapper" anti-pattern (that concerns x).
    w_t = jnp.pad(weight.T.astype(compute_dtype), ((0, 0), (0, O_pad - O)))
    b_row = bias.reshape(1, O).astype(jnp.float32)
    if O_pad != O:
        b_row = jnp.pad(b_row, ((0, 0), (0, O_pad - O)),
                        constant_values=-jnp.inf)

    out_cols = O if trim_in_kernel else O_pad

    # ---- explicit VMEM budget (with headroom, capped for v7x) ------------
    x_tile = block_b * D * 4
    o_tile = block_b * O_pad * max(4, out_dtype.itemsize)  # lane-padded in VMEM
    w_bytes = D * O_pad * compute_dtype.itemsize + O_pad * 4
    interm = 2 * block_b * O_pad * 4
    vmem_limit = int(min(2 * (x_tile + o_tile + w_bytes) + interm + (8 << 20),
                         48 << 20))

    kernel = functools.partial(_categorical_kernel, compute_dtype=compute_dtype)

    out = pl.pallas_call(
        kernel,
        out_shape=jax.ShapeDtypeStruct((B, out_cols), out_dtype),
        grid_spec=pltpu.PrefetchScalarGridSpec(
            num_scalar_prefetch=0,
            grid=grid,
            in_specs=[
                pl.BlockSpec((block_b, D), lambda i: (i, 0)),   # x tile (raw f32)
                # W^T / bias: constant index_map -> resident across steps.
                # (pipeline_mode=pl.Buffered(1) would drop their double
                #  buffering; at D*O_pad*2 ≈ 16 KiB it buys nothing here —
                #  enable it for large heads.)
                pl.BlockSpec((D, O_pad), lambda i: (0, 0)),
                pl.BlockSpec((1, O_pad), lambda i: (0, 0)),
            ],
            out_specs=pl.BlockSpec((block_b, out_cols), lambda i: (i, 0)),
        ),
        compiler_params=pltpu.CompilerParams(
            dimension_semantics=("parallel",),
            vmem_limit_bytes=vmem_limit,
        ),
    )(x, w_t, b_row)
    return out


def init_categorical_params(key, num_inputs, num_outputs, gain=0.01):
    """Orthogonal init (gain=0.01) for weight, zeros for bias — mirrors
    init_(nn.Linear(num_inputs, num_outputs)) in the reference module."""
    a = jax.random.normal(key, (num_outputs, num_inputs), dtype=jnp.float32)
    transpose = num_outputs < num_inputs
    mat = a.T if transpose else a            # QR wants a tall matrix
    q, r = jnp.linalg.qr(mat)
    d = jnp.sign(jnp.diagonal(r))
    q = q * d[None, :]                       # column-wise sign correction
    if transpose:
        q = q.T                              # back to (num_outputs, num_inputs)
    weight = gain * q
    bias = jnp.zeros((1, num_outputs), dtype=jnp.float32)
    return weight, bias


if __name__ == "__main__":
    key = jax.random.PRNGKey(0)
    k_x, k_w, k_x2 = jax.random.split(key, 3)

    batch = 8
    num_inputs = 32
    num_outputs = 16

    x = jax.random.normal(k_x, (batch, num_inputs), dtype=jnp.float32)
    weight, bias = init_categorical_params(k_w, num_inputs, num_outputs)

    # pure-JAX reference: Linear + Categorical logits normalization
    ref_logits = x @ weight.T + bias
    ref = ref_logits - jax.scipy.special.logsumexp(
        ref_logits, axis=-1, keepdims=True)

    # Fast path (bf16 MXU, f32 accumulation + f32 softmax math, f32 output).
    log_probs = categorical_forward(x, weight, bias)
    # Strict-accuracy path (f32 end to end) — keep for PPO-style ratios.
    log_probs_f32 = categorical_forward(x, weight, bias,
                                        compute_dtype=jnp.float32)
    jax.block_until_ready((log_probs, log_probs_f32))

    assert log_probs.shape == (batch, num_outputs)
    assert jnp.allclose(log_probs_f32, ref, atol=5e-4, rtol=5e-4), (
        "f32 path mismatch vs reference")
    assert jnp.allclose(log_probs, ref, atol=1e-2, rtol=1e-2), (
        "bf16 path mismatch vs reference")
    assert jnp.allclose(jnp.sum(jnp.exp(log_probs), axis=-1), 1.0, atol=1e-3)
    assert jnp.allclose(jnp.sum(jnp.exp(log_probs_f32), axis=-1), 1.0, atol=1e-3)

    # Exercise multi-step grid + partial last block + lane-dense padded output.
    batch2 = 200
    x2 = jax.random.normal(k_x2, (batch2, num_inputs), dtype=jnp.float32)
    ref2_logits = x2 @ weight.T + bias
    ref2 = ref2_logits - jax.scipy.special.logsumexp(
        ref2_logits, axis=-1, keepdims=True)

    lp2 = categorical_forward(x2, weight, bias, block_b=64,
                              compute_dtype=jnp.float32)
    lp2_pad = categorical_forward(x2, weight, bias, block_b=64,
                                  compute_dtype=jnp.float32,
                                  trim_in_kernel=False)
    jax.block_until_ready((lp2, lp2_pad))
    assert lp2.shape == (batch2, num_outputs)
    assert jnp.allclose(lp2, ref2, atol=5e-4, rtol=5e-4)
    assert jnp.allclose(lp2_pad[:, :num_outputs], ref2, atol=5e-4, rtol=5e-4)

    # TODO(synk): FixedCategorical.sample()/log_prob(action)/entropy() are not
    # part of this forward kernel; sampling would need a separate kernel using
    # pltpu.prng_seed / pltpu.prng_random_bits.
    print("KERNEL_OK")
</pallas_src>

<mosaic_0001>
module attributes {stable_mosaic.version = 11 : i64} {
  func.func @_categorical_kernel(%arg0: i32, %arg1: memref<8x32xf32, #tpu.memory_space<vmem>>, %arg2: memref<32x128xbf16, #tpu.memory_space<vmem>>, %arg3: memref<1x128xf32, #tpu.memory_space<vmem>>, %arg4: memref<8x16xf32, #tpu.memory_space<vmem>>) attributes {dimension_semantics = [#tpu.dimension_semantics<parallel>], iteration_bounds = array<i64: 1>, scalar_prefetch = 0 : i64, scratch_operands = 0 : i64, tpu.core_type = #tpu.core_type<tc>, window_params = [{transform_indices = @transform_0, window_bounds = array<i64: 8, 32>}, {pipeline_mode = #tpu.pipeline_mode<synchronous>, transform_indices = @transform_1, window_bounds = array<i64: 32, 128>}, {pipeline_mode = #tpu.pipeline_mode<synchronous>, transform_indices = @transform_2, window_bounds = array<i64: 1, 128>}, {transform_indices = @transform_3, window_bounds = array<i64: 8, 16>}]} {
    %c0 = arith.constant 0 : index
    %c0_0 = arith.constant 0 : index
    %0 = vector.load %arg1[%c0, %c0_0] : memref<8x32xf32, #tpu.memory_space<vmem>>, vector<8x32xf32>
    %1 = arith.truncf %0 : vector<8x32xf32> to vector<8x32xbf16>
    %c0_1 = arith.constant 0 : index
    %c0_2 = arith.constant 0 : index
    %2 = vector.load %arg2[%c0_1, %c0_2] : memref<32x128xbf16, #tpu.memory_space<vmem>>, vector<32x128xbf16>
    %cst = arith.constant dense<0.000000e+00> : vector<8x128xf32>
    %3 = tpu.matmul %1, %2, %cst {dimension_numbers = #tpu.dot_dimension_numbers<[1], [0], [0], [1], [0, 0, 1, 1], [], []>} : vector<8x32xbf16>, vector<32x128xbf16>, vector<8x128xf32> -> vector<8x128xf32>
    %c0_3 = arith.constant 0 : index
    %c0_4 = arith.constant 0 : index
    %4 = vector.load %arg3[%c0_3, %c0_4] : memref<1x128xf32, #tpu.memory_space<vmem>>, vector<1x128xf32>
    %5 = vector.broadcast %4 : vector<1x128xf32> to vector<8x128xf32>
    %6 = arith.addf %3, %5 : vector<8x128xf32>
    %cst_5 = arith.constant dense<0xFF800000> : vector<8xf32>
    %7 = vector.multi_reduction <maximumf>, %6, %cst_5 [1] : vector<8x128xf32> to vector<8xf32>
    %8 = vector.shape_cast %7 : vector<8xf32> to vector<8x1xf32>
    %9 = vector.broadcast %8 : vector<8x1xf32> to vector<8x128xf32>
    %10 = arith.subf %6, %9 : vector<8x128xf32>
    %11 = math.exp %10 : vector<8x128xf32>
    %cst_6 = arith.constant dense<0.000000e+00> : vector<8xf32>
    %12 = vector.multi_reduction <add>, %11, %cst_6 [1] : vector<8x128xf32> to vector<8xf32>
    %13 = vector.shape_cast %12 : vector<8xf32> to vector<8x1xf32>
    %14 = math.log %13 : vector<8x1xf32>
    %15 = vector.broadcast %14 : vector<8x1xf32> to vector<8x128xf32>
    %16 = arith.subf %10, %15 : vector<8x128xf32>
    %17 = vector.extract_strided_slice %16 {offsets = [0, 0], sizes = [8, 16], strides = [1, 1]} : vector<8x128xf32> to vector<8x16xf32>
    %c0_7 = arith.constant 0 : index
    %c0_8 = arith.constant 0 : index
    %18 = vector.load %arg4[%c0_7, %c0_8] : memref<8x16xf32, #tpu.memory_space<vmem>>, vector<8x16xf32>
    tpu.vector_store %arg4[%c0_7, %c0_8], %17 {strides = array<i32>} : memref<8x16xf32, #tpu.memory_space<vmem>>, vector<8x16xf32>,
    return
  }
  func.func @transform_0(%arg0: i32) -> (i32, i32) {
    %c0_i32 = arith.constant 0 : i32
    %c0_i32_0 = arith.constant 0 : i32
    return %arg0, %c0_i32 : i32, i32
  }
  func.func @transform_1(%arg0: i32) -> (i32, i32) {
    %c0_i32 = arith.constant 0 : i32
    %c0_i32_0 = arith.constant 0 : i32
    %c0_i32_1 = arith.constant 0 : i32
    return %c0_i32, %c0_i32_0 : i32, i32
  }
  func.func @transform_2(%arg0: i32) -> (i32, i32) {
    %c0_i32 = arith.constant 0 : i32
    %c0_i32_0 = arith.constant 0 : i32
    %c0_i32_1 = arith.constant 0 : i32
    return %c0_i32, %c0_i32_0 : i32, i32
  }
  func.func @transform_3(%arg0: i32) -> (i32, i32) {
    %c0_i32 = arith.constant 0 : i32
    %c0_i32_0 = arith.constant 0 : i32
    return %arg0, %c0_i32 : i32, i32
  }
}

</mosaic_0001>

<bundles_post_ra>
// kernel: categorical_forward.1
= control target key start
LH: loop header
LB: loop body
LE: loop exit
PB: predicated region body
PF: predicated region fallthrough
CT: control target
= control target key end

     0   :  { %v159_v1 = vmov 0.0   ;;  %vm160_vm0 = vmmov 0   ;;  %s206_s0 = inlined_call_operand.vmem [shape: f32[8,32], index: 0, kind: input, shape index: {}]   ;;  %s207_s1 = inlined_call_operand.vmem [shape: bf16[32,128], index: 1, kind: input, shape index: {}]   ;;  %s208_s2 = inlined_call_operand.vmem [shape: f32[1,128], index: 2, kind: input, shape index: {}]   ;;  %s209_s3 = inlined_call_operand.hbm [shape: f32[8,16], index: 3, kind: output, shape index: {}]  }
   0x1   :  { %v129_v0 = vld [vmem:[%s207_s1] sm:$0xff]   ;;  %118 = vmatprep.subr.bf16.mxu0 %v159_v1  ;;  %v130_v2 = vld [vmem:[%s207_s1 + $0x8] sm:$0xff]   ;;  %122 = vmatprep.mubr.msk.bf16.mxu0 %vm160_vm0, %v159_v1 }
   0x2   :  { %119 = vmatpush3.bf16.msra.mxu0 %v129_v0  ;;  %v16_v3 = vld [vmem:[%s206_s0] sm:$0xff] }
   0x3   :  { %8 = vsyncpa [#allocation3], 0  ;;  %120 = vmatprep.subr.bf16.mxu0 %v159_v1  ;;  %v17_v4 = vpack.c.bf16 %v16_v3, %v16_v3  ;;  %vm41_vm1 = vcmask 261120   ;;  %v111_v5 = vld [vmem:[%s208_s2] ss:$0 sm:$0xff]  ;;  %s161_s0 = smov [#allocation2]  }
   0x4   :  { %s103_s1 = sshll.u32 %s161_s0, 4  ;;  %vm95_vm2 = vcmask 130048   ;;  %s104_s1 = int_to_ptr.vmem [resolvable:$true] %s103_s1 }
   0x5   :  { %s135_s2 = scalar_lea.vmem %s104_s1, 128  ;;  %p140_p1 = scmp.lt.s32.totalorder %s104_s1, %s104_s1 }
   0x6   :  { %121 = vmatpush3.bf16.msra.mxu0 %v130_v2  ;;  %p136_p0 = scmp.ne.s32.totalorder %s104_s1, %s135_s2  ;;  %p141_p2 = scmp.lt.s32.totalorder %s135_s2, %s135_s2 }
   0x8   :  { %p142_p3 = por %p141_p2, %p140_p1 }
   0x9   :  { %123 = vmatmul.mubr.msk.bf16.vlgmr.msra.gmra.mrb[0].mxu0 %vm41_vm1, %v17_v4 }
   0xa   :  { %p143_p4 = pnand %p142_p3, %p136_p0 }
  0xdc   :  { %v79_v6 = vpop.f32.mrb[0].mxu0 }
  0xdd   :  { %v80_v7 = vadd.f32 %v111_v5, %v79_v6  ;;  %v124_v8 = vpop.f32.mrb[1].mxu0 }
  0xde   :  { %v82_v9 = vpop.f32.mrb[2].mxu0 }
  0xdf   :  { %85 = vmax.xlane.f32.xlu0 %v80_v7  ;;  %v125_v10 = vpop.f32.mrb[3].mxu0 }
 0x16c   :  { %v86_v11 = vpop.xlane.xlu0 %85 }
 0x16d   :  { %v87_v12 = vsub.f32 %v80_v7, %v86_v11 }
 0x16f   :  { %v88_v13 = vmul.f32 1.442695, %v87_v12 }
 0x171   :  { %131 = vpow2.f32 %v88_v13 }
 0x17b   :  { %v132_v14 = vpop.eup %131 }
 0x17c   :  { %90 = vadd.xlane.f32.xlu0 %v132_v14 }
 0x209   :  { %v91_v15 = vpop.xlane.xlu0 %90 }
 0x20a   :  { %133 = vlog2.f32 %v91_v15 }
 0x214   :  { %v134_v16 = vpop.eup %133 }
 0x215   :  { %v93_v17 = vmul.f32 0.6931472, %v134_v16 }
 0x217   :  { %v94_v18 = vsub.f32 %v87_v12, %v93_v17 }
 0x219   :  { %96 = vst.msk [vmem:[#allocation2] sm:$0xff] %vm95_vm2, %v94_v18 }
 0x21a   :  { %146 = shalt.err (!%p143_p4)
}
 0x21b   :  { %s147_s22 = scalar_lea.hbm %s209_s3, 128 }
 0x21c   :  { %p148_p5 = scmp.ne.s32.totalorder %s209_s3, %s147_s22  ;;  %p151_p6 = scmp.lt.u32.totalorder %s147_s22, %s209_s3 }
 0x21e   :  { %p153_p7 = pnand %p151_p6, %p148_p5 }
 0x220   :  { %156 = shalt.err (!%p153_p7)
}
 0x221   :  { %106 = dma.vmem_to_hbm [thread:$0]  %s104_s1, 128, %s209_s3, [#allocation3]  }
 0x222   :  { %157 = dma.done.wait [#allocation3], 128  }
 0x223   :  { %158 = vsyncadd [#allocation3], 4294967168 }
 0x224   :  { %110 = vsyncpa [#allocation3], 1 }

</bundles_post_ra>
